<compile_context>
chip_gen: v5e
topology: v5e:2x2
jax: 0.10.0
libtpu: 0.0.40
codegen_flags: <defaults>
</compile_context>

<pallas_src>
import jax
import jax.numpy as jnp
from jax.experimental import pallas as pl
from jax.experimental.pallas import tpu as pltpu

IN_DIM = 32
HIDDEN = 500
HIDDEN_PAD = 512   # 500 padded up to a multiple of 128 (lanes) / 8 (sublanes)
OUT_DIM = 16
OUT_PAD = 128      # lane-dense output / W3 / b3


def theta_d_kernel(x_ref, w1_ref, b1_ref, w2_ref, b2_ref, w3_ref, b3_ref, o_ref):
    x = x_ref[...]

    # ---- stage 1: fused (phi+eps) linear + ReLU ----
    x1 = jnp.maximum(
        jnp.dot(x, w1_ref[...], preferred_element_type=jnp.float32) + b1_ref[...],
        0.0)

    # ---- stage 2 ----
    x2 = jnp.maximum(
        jnp.dot(x1, w2_ref[...], preferred_element_type=jnp.float32) + b2_ref[...],
        0.0)

    # ---- stage 3 (no ReLU) ----
    o_ref[...] = (
        jnp.dot(x2, w3_ref[...], preferred_element_type=jnp.float32) + b3_ref[...]
    ).astype(o_ref.dtype)


def theta_d_forward(x, fused_params, *, tile_b=256):
    """x: (B, IN_DIM) f32. fused_params: output of fuse_params(). -> (B, OUT_DIM).

    tile_b: B-tile for the batched/grid path.  256 matches the v6e/v7x
    2x256x256 MXU; use 128 on v5e (4x128x128 MXUs).
    """
    w1, b1, w2, b2, w3, b3 = fused_params
    B = x.shape[0]

    if B <= tile_b:
        # Small batch: single gridless call, every operand one full VMEM block.
        # (Do NOT add a fine hidden-dim grid here; per-step overhead > compute.)
        out = pl.pallas_call(
            theta_d_kernel,
            out_shape=jax.ShapeDtypeStruct((B, OUT_PAD), jnp.float32),
            in_specs=[pl.BlockSpec(memory_space=pltpu.VMEM)] * 7,
            out_specs=pl.BlockSpec(memory_space=pltpu.VMEM),
            compiler_params=pltpu.CompilerParams(vmem_limit_bytes=8 << 20),
        )(x, w1, b1, w2, b2, w3, b3)
        return out[:, :OUT_DIM]

    # Large batch: grid over B-tiles.  Weight/bias index_maps are constant,
    # so they are DMA'd once and stay VMEM-resident for every B tile; the
    # weight HBM traffic (~1.3 MiB f32) amortizes across the whole batch.
    num_tiles = pl.cdiv(B, tile_b)
    b_pad = num_tiles * tile_b
    if b_pad != B:
        x = jnp.pad(x, ((0, b_pad - B), (0, 0)))   # padded rows sliced off below

    const = lambda i: (0, 0)
    out = pl.pallas_call(
        theta_d_kernel,
        out_shape=jax.ShapeDtypeStruct((b_pad, OUT_PAD), jnp.float32),
        grid=(num_tiles,),
        in_specs=[
            pl.BlockSpec((tile_b, IN_DIM), lambda i: (i, 0)),        # x tile
            pl.BlockSpec((IN_DIM, HIDDEN_PAD), const),               # W1 (resident)
            pl.BlockSpec((1, HIDDEN_PAD), const),                    # b1
            pl.BlockSpec((HIDDEN_PAD, HIDDEN_PAD), const),           # W2 (resident)
            pl.BlockSpec((1, HIDDEN_PAD), const),                    # b2
            pl.BlockSpec((HIDDEN_PAD, OUT_PAD), const),              # W3 (resident)
            pl.BlockSpec((1, OUT_PAD), const),                       # b3
        ],
        out_specs=pl.BlockSpec((tile_b, OUT_PAD), lambda i: (i, 0)),
        compiler_params=pltpu.CompilerParams(
            dimension_semantics=("parallel",),   # v7x: shard B tiles over both TCs
            vmem_limit_bytes=8 << 20),
    )(x, w1, b1, w2, b2, w3, b3)
    return out[:B, :OUT_DIM]


# -------------------------- parameter handling ------------------------------

def init_linear(key, fan_in, fan_out):
    """PyTorch-style nn.Linear init (uniform +-1/sqrt(fan_in)), deterministic.

    Weight returned already transposed to (fan_in, fan_out); bias as (1, fan_out).
    """
    kw, kb = jax.random.split(key)
    bound = 1.0 / jnp.sqrt(jnp.float32(fan_in))
    w = jax.random.uniform(kw, (fan_in, fan_out), jnp.float32, -bound, bound)
    b = jax.random.uniform(kb, (1, fan_out), jnp.float32, -bound, bound)
    return w, b


def make_params(key):
    """Raw, separate phi/epsilon parameters (mirrors the PyTorch module)."""
    keys = jax.random.split(key, 6)
    wp1, bp1 = init_linear(keys[0], IN_DIM, HIDDEN)
    wp2, bp2 = init_linear(keys[1], HIDDEN, HIDDEN)
    wp3, bp3 = init_linear(keys[2], HIDDEN, OUT_DIM)
    we1, be1 = init_linear(keys[3], IN_DIM, HIDDEN)
    we2, be2 = init_linear(keys[4], HIDDEN, HIDDEN)
    we3, be3 = init_linear(keys[5], HIDDEN, OUT_DIM)
    return (wp1, bp1, we1, be1, wp2, bp2, we2, be2, wp3, bp3, we3, be3)


def _pad_to(a, shape):
    pads = [(0, t - s) for s, t in zip(a.shape, shape)]
    return jnp.pad(a, pads)


def fuse_params(params, weight_dtype=jnp.float32):
    """Fold phi+epsilon branches per stage; zero-pad hidden 500->512, out 16->128.

    Zero padding is exact: padded hidden activations are relu(0+0)=0, padded
    fan-in rows / padded output columns are 0 (and the extra output columns
    are sliced off in the wrapper).
    weight_dtype=jnp.bfloat16 halves weight HBM traffic but needs ~2e-3 tol.
    """
    (wp1, bp1, we1, be1,
     wp2, bp2, we2, be2,
     wp3, bp3, we3, be3) = params
    w1 = _pad_to(wp1 + we1, (IN_DIM, HIDDEN_PAD)).astype(weight_dtype)
    b1 = _pad_to(bp1 + be1, (1, HIDDEN_PAD))
    w2 = _pad_to(wp2 + we2, (HIDDEN_PAD, HIDDEN_PAD)).astype(weight_dtype)
    b2 = _pad_to(bp2 + be2, (1, HIDDEN_PAD))
    w3 = _pad_to(wp3 + we3, (HIDDEN_PAD, OUT_PAD)).astype(weight_dtype)
    b3 = _pad_to(bp3 + be3, (1, OUT_PAD))
    return (w1, b1, w2, b2, w3, b3)


def theta_d_reference(x, params):
    """Pure-JAX reference on the ORIGINAL unfused, unpadded parameters."""
    (wp1, bp1, we1, be1,
     wp2, bp2, we2, be2,
     wp3, bp3, we3, be3) = params
    x1 = jnp.maximum((x @ wp1 + bp1) + (x @ we1 + be1), 0.0)
    x2 = jnp.maximum((x1 @ wp2 + bp2) + (x1 @ we2 + be2), 0.0)
    return (x2 @ wp3 + bp3) + (x2 @ we3 + be3)


if __name__ == "__main__":
    key = jax.random.PRNGKey(0)
    k_x, k_p, k_x2, k_x3 = jax.random.split(key, 4)

    params = make_params(k_p)
    fused = fuse_params(params)

    # --- small batch: gridless single-block path ---
    B_small = 8
    x_small = jax.random.normal(k_x, (B_small, IN_DIM), jnp.float32)
    out_small = jax.block_until_ready(theta_d_forward(x_small, fused))
    ref_small = theta_d_reference(x_small, params)
    assert out_small.shape == (B_small, OUT_DIM)
    assert jnp.allclose(out_small, ref_small, atol=1e-4, rtol=1e-4), \
        "small-B mismatch vs JAX reference"

    # --- large batch: B-grid path, weights VMEM-resident across tiles,
    #     "parallel" B axis (2 tiles -> both TensorCores on v7x) ---
    B_large = 512
    x_large = jax.random.normal(k_x2, (B_large, IN_DIM), jnp.float32)
    out_large = jax.block_until_ready(theta_d_forward(x_large, fused, tile_b=256))
    ref_large = theta_d_reference(x_large, params)
    assert out_large.shape == (B_large, OUT_DIM)
    assert jnp.allclose(out_large, ref_large, atol=1e-4, rtol=1e-4), \
        "large-B mismatch vs JAX reference"

    # --- non-multiple-of-tile batch: exercises the B-padding path ---
    B_odd = 300
    x_odd = jax.random.normal(k_x3, (B_odd, IN_DIM), jnp.float32)
    out_odd = jax.block_until_ready(theta_d_forward(x_odd, fused, tile_b=256))
    ref_odd = theta_d_reference(x_odd, params)
    assert out_odd.shape == (B_odd, OUT_DIM)
    assert jnp.allclose(out_odd, ref_odd, atol=1e-4, rtol=1e-4), \
        "odd-B mismatch vs JAX reference"

    print("KERNEL_OK")
</pallas_src>

<mosaic_0001>
module attributes {stable_mosaic.version = 11 : i64} {
  func.func @theta_d_kernel(%arg0: memref<8x32xf32, #tpu.memory_space<vmem>>, %arg1: memref<32x512xf32, #tpu.memory_space<vmem>>, %arg2: memref<1x512xf32, #tpu.memory_space<vmem>>, %arg3: memref<512x512xf32, #tpu.memory_space<vmem>>, %arg4: memref<1x512xf32, #tpu.memory_space<vmem>>, %arg5: memref<512x128xf32, #tpu.memory_space<vmem>>, %arg6: memref<1x128xf32, #tpu.memory_space<vmem>>, %arg7: memref<8x128xf32, #tpu.memory_space<vmem>>) attributes {dimension_semantics = [], scalar_prefetch = 0 : i64, scratch_operands = 0 : i64, tpu.core_type = #tpu.core_type<tc>} {
    %c0 = arith.constant 0 : index
    %c0_0 = arith.constant 0 : index
    %0 = vector.load %arg0[%c0, %c0_0] : memref<8x32xf32, #tpu.memory_space<vmem>>, vector<8x32xf32>
    %c0_1 = arith.constant 0 : index
    %c0_2 = arith.constant 0 : index
    %1 = vector.load %arg1[%c0_1, %c0_2] : memref<32x512xf32, #tpu.memory_space<vmem>>, vector<32x512xf32>
    %cst = arith.constant dense<0.000000e+00> : vector<8x512xf32>
    %2 = tpu.matmul %0, %1, %cst {dimension_numbers = #tpu.dot_dimension_numbers<[1], [0], [0], [1], [0, 0, 1, 1], [], []>} : vector<8x32xf32>, vector<32x512xf32>, vector<8x512xf32> -> vector<8x512xf32>
    %c0_3 = arith.constant 0 : index
    %c0_4 = arith.constant 0 : index
    %3 = vector.load %arg2[%c0_3, %c0_4] : memref<1x512xf32, #tpu.memory_space<vmem>>, vector<1x512xf32>
    %4 = vector.broadcast %3 : vector<1x512xf32> to vector<8x512xf32>
    %5 = arith.addf %2, %4 : vector<8x512xf32>
    %cst_5 = arith.constant 0.000000e+00 : f32
    %6 = vector.broadcast %cst_5 : f32 to vector<8x512xf32>
    %7 = arith.maximumf %5, %6 : vector<8x512xf32>
    %c0_6 = arith.constant 0 : index
    %c0_7 = arith.constant 0 : index
    %8 = vector.load %arg3[%c0_6, %c0_7] : memref<512x512xf32, #tpu.memory_space<vmem>>, vector<512x512xf32>
    %cst_8 = arith.constant dense<0.000000e+00> : vector<8x512xf32>
    %9 = tpu.matmul %7, %8, %cst_8 {dimension_numbers = #tpu.dot_dimension_numbers<[1], [0], [0], [1], [0, 0, 1, 1], [], []>} : vector<8x512xf32>, vector<512x512xf32>, vector<8x512xf32> -> vector<8x512xf32>
    %c0_9 = arith.constant 0 : index
    %c0_10 = arith.constant 0 : index
    %10 = vector.load %arg4[%c0_9, %c0_10] : memref<1x512xf32, #tpu.memory_space<vmem>>, vector<1x512xf32>
    %11 = vector.broadcast %10 : vector<1x512xf32> to vector<8x512xf32>
    %12 = arith.addf %9, %11 : vector<8x512xf32>
    %cst_11 = arith.constant 0.000000e+00 : f32
    %13 = vector.broadcast %cst_11 : f32 to vector<8x512xf32>
    %14 = arith.maximumf %12, %13 : vector<8x512xf32>
    %c0_12 = arith.constant 0 : index
    %c0_13 = arith.constant 0 : index
    %15 = vector.load %arg5[%c0_12, %c0_13] : memref<512x128xf32, #tpu.memory_space<vmem>>, vector<512x128xf32>
    %cst_14 = arith.constant dense<0.000000e+00> : vector<8x128xf32>
    %16 = tpu.matmul %14, %15, %cst_14 {dimension_numbers = #tpu.dot_dimension_numbers<[1], [0], [0], [1], [0, 0, 1, 1], [], []>} : vector<8x512xf32>, vector<512x128xf32>, vector<8x128xf32> -> vector<8x128xf32>
    %c0_15 = arith.constant 0 : index
    %c0_16 = arith.constant 0 : index
    %17 = vector.load %arg6[%c0_15, %c0_16] : memref<1x128xf32, #tpu.memory_space<vmem>>, vector<1x128xf32>
    %18 = vector.broadcast %17 : vector<1x128xf32> to vector<8x128xf32>
    %19 = arith.addf %16, %18 : vector<8x128xf32>
    %c0_17 = arith.constant 0 : index
    %c0_18 = arith.constant 0 : index
    %20 = vector.load %arg7[%c0_17, %c0_18] : memref<8x128xf32, #tpu.memory_space<vmem>>, vector<8x128xf32>
    tpu.vector_store %arg7[%c0_17, %c0_18], %19 {strides = array<i32>} : memref<8x128xf32, #tpu.memory_space<vmem>>, vector<8x128xf32>,
    return
  }
}

</mosaic_0001>

<bundles_post_ra>
// kernel: tpu_custom_call.1
= control target key start
LH: loop header
LB: loop body
LE: loop exit
PB: predicated region body
PF: predicated region fallthrough
CT: control target
= control target key end

     0   :  { %12 = vsyncpa [#allocation3], 0  ;;  %s1288_s0 = inlined_call_operand.hbm [shape: f32[8,32], index: 0, kind: input, shape index: {}]   ;;  %s1289_s1 = inlined_call_operand.hbm [shape: f32[32,512], index: 1, kind: input, shape index: {}]   ;;  %s1290_s2 = inlined_call_operand.hbm [shape: f32[1,512], index: 2, kind: input, shape index: {}]   ;;  %s1291_s3 = inlined_call_operand.hbm [shape: f32[512,512], index: 3, kind: input, shape index: {}]   ;;  %s1292_s4 = inlined_call_operand.hbm [shape: f32[1,512], index: 4, kind: input, shape index: {}]   ;;  %s1293_s5 = inlined_call_operand.hbm [shape: f32[512,128], index: 5, kind: input, shape index: {}]   ;;  %s1294_s6 = inlined_call_operand.vmem [shape: f32[1,128], index: 6, kind: input, shape index: {}]   ;;  %s1295_s7 = inlined_call_operand.hbm [shape: f32[8,128], index: 7, kind: output, shape index: {}]  }
   0x1   :  { %13 = vsyncpa [#allocation6], 0 }
   0x2   :  { %14 = vsyncpa [#allocation9], 0 }
   0x3   :  { %15 = vsyncpa [#allocation12], 0  ;;  %s32_s26 = sshll.u32 %s1289_s1, 4  ;;  %s33_s26 = int_to_ptr.hbm [resolvable:$true] %s32_s26 }
   0x4   :  { %16 = vsyncpa [#allocation4], 0  ;;  %s1183_s27 = smov [#allocation5]   ;;  %s56_s8 = sshll.u32 %s1291_s3, 4  ;;  %s57_s8 = int_to_ptr.hbm [resolvable:$true] %s56_s8 }
   0x5   :  { %s34_s28 = sshll.u32 %s1183_s27, 4  ;;  %s1184_s9 = smov 512   ;;  %s35_s28 = int_to_ptr.vmem [resolvable:$true] %s34_s28 }
   0x6   :  { %s1185_s10 = smov 32   ;;  %s1186_s11 = smov [#allocation8]  }
   0x7   :  { %40 = dma.hbm_to_vmem [thread:$0]  %s33_s26, 2048, %s35_s28, [#allocation6], %s1184_s9, %s1184_s9, %s1185_s10  }
   0x8   :  { %s58_s12 = sshll.u32 %s1186_s11, 4  ;;  %s22_s15 = sshll.u32 %s1288_s0, 4  ;;  %s59_s12 = int_to_ptr.vmem [resolvable:$true] %s58_s12  ;;  %s23_s15 = int_to_ptr.hbm [resolvable:$true] %s22_s15 }
   0x9   :  { %64 = dma.hbm_to_vmem [thread:$0]  %s57_s8, 32768, %s59_s12, [#allocation9], %s1184_s9, %s1184_s9, %s1185_s10  }
   0xa   :  { %s46_s17 = sshll.u32 %s1290_s2, 4  ;;  %s1187_s18 = smov [#allocation2]   ;;  %s47_s17 = int_to_ptr.hbm [resolvable:$true] %s46_s17 }
   0xb   :  { %s24_s19 = sshll.u32 %s1187_s18, 4  ;;  %s1188_s3 = smov [#allocation7]   ;;  %s25_s19 = int_to_ptr.vmem [resolvable:$true] %s24_s19 }
   0xc   :  { %27 = dma.hbm_to_vmem [thread:$0]  %s23_s15, 128, %s25_s19, [#allocation3]  }
   0xd   :  { %s48_s20 = sshll.u32 %s1188_s3, 4  ;;  %s70_s23 = sshll.u32 %s1292_s4, 4  ;;  %s49_s20 = int_to_ptr.vmem [resolvable:$true] %s48_s20  ;;  %s71_s23 = int_to_ptr.hbm [resolvable:$true] %s70_s23 }
   0xe   :  { %51 = dma.hbm_to_vmem [thread:$0]  %s47_s17, 64, %s49_s20, [#allocation6]  }
   0xf   :  { %s80_s25 = sshll.u32 %s1293_s5, 4  ;;  %s1189_s26 = smov [#allocation10]   ;;  %s81_s25 = int_to_ptr.hbm [resolvable:$true] %s80_s25 }
  0x10   :  { %s72_s2 = sshll.u32 %s1189_s26, 4  ;;  %s1190_s27 = smov [#allocation11]   ;;  %s73_s2 = int_to_ptr.vmem [resolvable:$true] %s72_s2 }
  0x11   :  { %75 = dma.hbm_to_vmem [thread:$0]  %s71_s23, 64, %s73_s2, [#allocation9]  }
  0x12   :  { %s82_s28 = sshll.u32 %s1190_s27, 4  ;;  %s1191_s29 = smov 128   ;;  %s83_s28 = int_to_ptr.vmem [resolvable:$true] %s82_s28 }
  0x13   :  { %s1192_s30 = smov 8  }
  0x14   :  { %88 = dma.hbm_to_vmem [thread:$0]  %s81_s25, 8192, %s83_s28, [#allocation12], %s1191_s29, %s1191_s29, %s1192_s30  }
  0x15   :  { %1173 = dma.done.wait [#allocation3], 128  }
  0x16   :  { %1174 = vsyncadd [#allocation3], 4294967168 }
  0x17   :  { %1175 = dma.done.wait [#allocation6], 2112  }
  0x18   :  { %1176 = vsyncadd [#allocation6], 4294965184 }
  0x19   :  { %1177 = dma.done.wait [#allocation9], 32832  }
  0x1a   :  { %1178 = vsyncadd [#allocation9], 4294934464 }
  0x1b   :  { %1179 = dma.done.wait [#allocation12], 8192  }
  0x1c   :  { %1180 = vsyncadd [#allocation12], 4294959104  ;;  %v128_v0 = vld [vmem:[#allocation5 + $0x60] sm:$0xff]  ;;  %v129_v1 = vld [vmem:[#allocation5 + $0x68] sm:$0xff]  ;;  %vm142_vm0 = vcmask 261120   ;;  %s1193_s8 = smov [#allocation13]  }
  0x1d   :  { %v130_v2 = vld [vmem:[#allocation5 + $0x70] sm:$0xff]  ;;  %158 = vmatpush.msra.mxu0 %v128_v0  ;;  %178 = vmatpush.msra.mxu1 %v129_v1  ;;  %v131_v3 = vld [vmem:[#allocation5 + $0x78] sm:$0xff]  ;;  %v124_v4 = vld [vmem:[#allocation5 + $0x40] sm:$0xff]  ;;  %s974_s9 = sshll.u32 %s1193_s8, 4  ;;  %s976_s12 = sshll.u32 %s1295_s7, 4  ;;  %s975_s9 = int_to_ptr.vmem [resolvable:$true] %s974_s9  ;;  %s977_s12 = int_to_ptr.hbm [resolvable:$true] %s976_s12 }
  0x1e   :  { %v125_v5 = vld [vmem:[#allocation5 + $0x48] sm:$0xff]  ;;  %198 = vmatpush.msra.mxu2 %v130_v2  ;;  %218 = vmatpush.msra.mxu3 %v131_v3  ;;  %v126_v6 = vld [vmem:[#allocation5 + $0x50] sm:$0xff]  ;;  %v127_v7 = vld [vmem:[#allocation5 + $0x58] sm:$0xff] }
  0x1f   :  { %v120_v8 = vld [vmem:[#allocation5 + $0x20] sm:$0xff]  ;;  %159 = vmatpush.msra.mxu0 %v124_v4  ;;  %179 = vmatpush.msra.mxu1 %v125_v5  ;;  %v121_v9 = vld [vmem:[#allocation5 + $0x28] sm:$0xff]  ;;  %v122_v10 = vld [vmem:[#allocation5 + $0x30] sm:$0xff] }
  0x20   :  { %v123_v11 = vld [vmem:[#allocation5 + $0x38] sm:$0xff]  ;;  %199 = vmatpush.msra.mxu2 %v126_v6  ;;  %219 = vmatpush.msra.mxu3 %v127_v7  ;;  %v116_v12 = vld [vmem:[#allocation5] sm:$0xff]  ;;  %v117_v13 = vld [vmem:[#allocation5 + $0x8] sm:$0xff] }
  0x21   :  { %160 = vmatpush.msra.mxu0 %v120_v8  ;;  %180 = vmatpush.msra.mxu1 %v121_v9  ;;  %v118_v14 = vld [vmem:[#allocation5 + $0x10] sm:$0xff]  ;;  %v119_v15 = vld [vmem:[#allocation5 + $0x18] sm:$0xff]  ;;  %v290_v17 = vld [vmem:[#allocation8 + $0x1e0] sm:$0xff] }
  0x22   :  { %200 = vmatpush.msra.mxu2 %v122_v10  ;;  %220 = vmatpush.msra.mxu3 %v123_v11  ;;  %v115_v16 = vld [vmem:[#allocation2] sm:$0xff]  ;;  %v354_v18 = vld [vmem:[#allocation8 + $0x3e0] sm:$0xff] }
  0x23   :  { %161 = vmatpush.msra.mxu0 %v116_v12  ;;  %181 = vmatpush.msra.mxu1 %v117_v13  ;;  %v418_v19 = vld [vmem:[#allocation8 + $0x5e0] sm:$0xff] }
  0x24   :  { %201 = vmatpush.msra.mxu2 %v118_v14  ;;  %221 = vmatpush.msra.mxu3 %v119_v15  ;;  %v482_v20 = vld [vmem:[#allocation8 + $0x7e0] sm:$0xff]  ;;  %v291_v15 = vld [vmem:[#allocation8 + $0x1e8] sm:$0xff] }
  0x25   :  { %989 = vmatmul.msk.f32.vlgmr.msra.gmra.mxu0 %vm142_vm0, %v115_v16  ;;  %990 = vmatmul.msk.f32.vlgmr.msra.gmra.mxu1 %vm142_vm0, %v115_v16  ;;  %v286_v21 = vld [vmem:[#allocation8 + $0x1c0] sm:$0xff] }
  0x26   :  { %991 = vmatmul.msk.f32.vlgmr.msra.gmra.mxu2 %vm142_vm0, %v115_v16  ;;  %992 = vmatmul.msk.f32.vlgmr.msra.gmra.mxu3 %vm142_vm0, %v115_v16  ;;  %v350_v22 = vld [vmem:[#allocation8 + $0x3c0] sm:$0xff]  ;;  %v355_v16 = vld [vmem:[#allocation8 + $0x3e8] sm:$0xff] }
  0x27   :  { %496 = vmatpush.msrb.mxu0 %v290_v17  ;;  %516 = vmatpush.msrb.mxu1 %v354_v18  ;;  %v414_v23 = vld [vmem:[#allocation8 + $0x5c0] sm:$0xff] }
  0x28   :  { %v478_v24 = vld [vmem:[#allocation8 + $0x7c0] sm:$0xff]  ;;  %536 = vmatpush.msrb.mxu2 %v418_v19  ;;  %556 = vmatpush.msrb.mxu3 %v482_v20  ;;  %v287_v19 = vld [vmem:[#allocation8 + $0x1c8] sm:$0xff] }
  0x29   :  { %v282_v25 = vld [vmem:[#allocation8 + $0x1a0] sm:$0xff]  ;;  %497 = vmatpush.msrb.mxu0 %v286_v21  ;;  %517 = vmatpush.msrb.mxu1 %v350_v22  ;;  %v351_v20 = vld [vmem:[#allocation8 + $0x3c8] sm:$0xff] }
  0x2a   :  { %v346_v26 = vld [vmem:[#allocation8 + $0x3a0] sm:$0xff]  ;;  %537 = vmatpush.msrb.mxu2 %v414_v23  ;;  %557 = vmatpush.msrb.mxu3 %v478_v24  ;;  %v419_v21 = vld [vmem:[#allocation8 + $0x5e8] sm:$0xff] }
  0x2b   :  { %v410_v27 = vld [vmem:[#allocation8 + $0x5a0] sm:$0xff]  ;;  %498 = vmatpush.msrb.mxu0 %v282_v25  ;;  %518 = vmatpush.msrb.mxu1 %v346_v26  ;;  %v483_v22 = vld [vmem:[#allocation8 + $0x7e8] sm:$0xff] }
  0x2c   :  { %v474_v28 = vld [vmem:[#allocation8 + $0x7a0] sm:$0xff]  ;;  %538 = vmatpush.msrb.mxu2 %v410_v27  ;;  %v283_v23 = vld [vmem:[#allocation8 + $0x1a8] sm:$0xff] }
  0x2d   :  { %v278_v29 = vld [vmem:[#allocation8 + $0x180] sm:$0xff]  ;;  %558 = vmatpush.msrb.mxu3 %v474_v28  ;;  %v347_v24 = vld [vmem:[#allocation8 + $0x3a8] sm:$0xff] }
  0x2e   :  { %v342_v30 = vld [vmem:[#allocation8 + $0x380] sm:$0xff]  ;;  %499 = vmatpush.msrb.mxu0 %v278_v29  ;;  %v415_v25 = vld [vmem:[#allocation8 + $0x5c8] sm:$0xff] }
  0x2f   :  { %v406_v31 = vld [vmem:[#allocation8 + $0x580] sm:$0xff]  ;;  %519 = vmatpush.msrb.mxu1 %v342_v30  ;;  %v479_v26 = vld [vmem:[#allocation8 + $0x7c8] sm:$0xff] }
  0x30   :  { %v470_v32 = vld [vmem:[#allocation8 + $0x780] sm:$0xff]  ;;  %539 = vmatpush.msrb.mxu2 %v406_v31  ;;  %v279_v27 = vld [vmem:[#allocation8 + $0x188] sm:$0xff] }
  0x31   :  { %v274_v33 = vld [vmem:[#allocation8 + $0x160] sm:$0xff]  ;;  %559 = vmatpush.msrb.mxu3 %v470_v32  ;;  %v343_v28 = vld [vmem:[#allocation8 + $0x388] sm:$0xff] }
  0x32   :  { %v338_v34 = vld [vmem:[#allocation8 + $0x360] sm:$0xff]  ;;  %500 = vmatpush.msrb.mxu0 %v274_v33  ;;  %v411_v29 = vld [vmem:[#allocation8 + $0x5a8] sm:$0xff] }
  0x33   :  { %v402_v35 = vld [vmem:[#allocation8 + $0x560] sm:$0xff]  ;;  %520 = vmatpush.msrb.mxu1 %v338_v34  ;;  %v475_v30 = vld [vmem:[#allocation8 + $0x7a8] sm:$0xff] }
  0x34   :  { %v466_v36 = vld [vmem:[#allocation8 + $0x760] sm:$0xff]  ;;  %540 = vmatpush.msrb.mxu2 %v402_v35  ;;  %v275_v31 = vld [vmem:[#allocation8 + $0x168] sm:$0xff] }
  0x35   :  { %v270_v37 = vld [vmem:[#allocation8 + $0x140] sm:$0xff]  ;;  %560 = vmatpush.msrb.mxu3 %v466_v36  ;;  %v339_v32 = vld [vmem:[#allocation8 + $0x368] sm:$0xff] }
  0x36   :  { %v334_v38 = vld [vmem:[#allocation8 + $0x340] sm:$0xff]  ;;  %501 = vmatpush.msrb.mxu0 %v270_v37  ;;  %v407_v33 = vld [vmem:[#allocation8 + $0x588] sm:$0xff] }
  0x37   :  { %v398_v39 = vld [vmem:[#allocation8 + $0x540] sm:$0xff]  ;;  %521 = vmatpush.msrb.mxu1 %v334_v38  ;;  %v471_v34 = vld [vmem:[#allocation8 + $0x788] sm:$0xff] }
  0x38   :  { %v462_v40 = vld [vmem:[#allocation8 + $0x740] sm:$0xff]  ;;  %541 = vmatpush.msrb.mxu2 %v398_v39  ;;  %v271_v35 = vld [vmem:[#allocation8 + $0x148] sm:$0xff] }
  0x39   :  { %v266_v41 = vld [vmem:[#allocation8 + $0x120] sm:$0xff]  ;;  %561 = vmatpush.msrb.mxu3 %v462_v40  ;;  %v335_v36 = vld [vmem:[#allocation8 + $0x348] sm:$0xff] }
  0x3a   :  { %v330_v42 = vld [vmem:[#allocation8 + $0x320] sm:$0xff]  ;;  %502 = vmatpush.msrb.mxu0 %v266_v41  ;;  %v403_v37 = vld [vmem:[#allocation8 + $0x568] sm:$0xff] }
  0x3b   :  { %v394_v43 = vld [vmem:[#allocation8 + $0x520] sm:$0xff]  ;;  %522 = vmatpush.msrb.mxu1 %v330_v42  ;;  %v467_v38 = vld [vmem:[#allocation8 + $0x768] sm:$0xff] }
  0x3c   :  { %v458_v44 = vld [vmem:[#allocation8 + $0x720] sm:$0xff]  ;;  %542 = vmatpush.msrb.mxu2 %v394_v43  ;;  %v267_v39 = vld [vmem:[#allocation8 + $0x128] sm:$0xff] }
  0x3d   :  { %v262_v45 = vld [vmem:[#allocation8 + $0x100] sm:$0xff]  ;;  %562 = vmatpush.msrb.mxu3 %v458_v44  ;;  %v331_v40 = vld [vmem:[#allocation8 + $0x328] sm:$0xff] }
  0x3e   :  { %v326_v46 = vld [vmem:[#allocation8 + $0x300] sm:$0xff]  ;;  %503 = vmatpush.msrb.mxu0 %v262_v45  ;;  %v399_v41 = vld [vmem:[#allocation8 + $0x548] sm:$0xff] }
  0x3f   :  { %v390_v47 = vld [vmem:[#allocation8 + $0x500] sm:$0xff]  ;;  %523 = vmatpush.msrb.mxu1 %v326_v46  ;;  %v463_v42 = vld [vmem:[#allocation8 + $0x748] sm:$0xff] }
  0x40   :  { %v454_v48 = vld [vmem:[#allocation8 + $0x700] sm:$0xff]  ;;  %543 = vmatpush.msrb.mxu2 %v390_v47  ;;  %v263_v43 = vld [vmem:[#allocation8 + $0x108] sm:$0xff] }
  0x41   :  { %v258_v49 = vld [vmem:[#allocation8 + $0xe0] sm:$0xff]  ;;  %563 = vmatpush.msrb.mxu3 %v454_v48  ;;  %v327_v44 = vld [vmem:[#allocation8 + $0x308] sm:$0xff] }
  0x42   :  { %v322_v50 = vld [vmem:[#allocation8 + $0x2e0] sm:$0xff]  ;;  %504 = vmatpush.msrb.mxu0 %v258_v49  ;;  %v395_v45 = vld [vmem:[#allocation8 + $0x528] sm:$0xff] }
  0x43   :  { %v386_v51 = vld [vmem:[#allocation8 + $0x4e0] sm:$0xff]  ;;  %524 = vmatpush.msrb.mxu1 %v322_v50  ;;  %v459_v46 = vld [vmem:[#allocation8 + $0x728] sm:$0xff] }
  0x44   :  { %v450_v52 = vld [vmem:[#allocation8 + $0x6e0] sm:$0xff]  ;;  %544 = vmatpush.msrb.mxu2 %v386_v51  ;;  %v259_v47 = vld [vmem:[#allocation8 + $0xe8] sm:$0xff] }
  0x45   :  { %v254_v53 = vld [vmem:[#allocation8 + $0xc0] sm:$0xff]  ;;  %564 = vmatpush.msrb.mxu3 %v450_v52  ;;  %v323_v48 = vld [vmem:[#allocation8 + $0x2e8] sm:$0xff] }
  0x46   :  { %v318_v54 = vld [vmem:[#allocation8 + $0x2c0] sm:$0xff]  ;;  %505 = vmatpush.msrb.mxu0 %v254_v53  ;;  %v391_v49 = vld [vmem:[#allocation8 + $0x508] sm:$0xff] }
  0x47   :  { %v382_v55 = vld [vmem:[#allocation8 + $0x4c0] sm:$0xff]  ;;  %525 = vmatpush.msrb.mxu1 %v318_v54  ;;  %v455_v50 = vld [vmem:[#allocation8 + $0x708] sm:$0xff] }
  0x48   :  { %v446_v56 = vld [vmem:[#allocation8 + $0x6c0] sm:$0xff]  ;;  %545 = vmatpush.msrb.mxu2 %v382_v55  ;;  %v255_v51 = vld [vmem:[#allocation8 + $0xc8] sm:$0xff] }
  0x49   :  { %v250_v57 = vld [vmem:[#allocation8 + $0xa0] sm:$0xff]  ;;  %565 = vmatpush.msrb.mxu3 %v446_v56  ;;  %v319_v52 = vld [vmem:[#allocation8 + $0x2c8] sm:$0xff] }
  0x4a   :  { %v314_v58 = vld [vmem:[#allocation8 + $0x2a0] sm:$0xff]  ;;  %506 = vmatpush.msrb.mxu0 %v250_v57  ;;  %v387_v53 = vld [vmem:[#allocation8 + $0x4e8] sm:$0xff] }
  0x4b   :  { %v378_v59 = vld [vmem:[#allocation8 + $0x4a0] sm:$0xff]  ;;  %526 = vmatpush.msrb.mxu1 %v314_v58  ;;  %v451_v54 = vld [vmem:[#allocation8 + $0x6e8] sm:$0xff] }
  0x4c   :  { %v442_v60 = vld [vmem:[#allocation8 + $0x6a0] sm:$0xff]  ;;  %546 = vmatpush.msrb.mxu2 %v378_v59  ;;  %v251_v55 = vld [vmem:[#allocation8 + $0xa8] sm:$0xff] }
  0x4d   :  { %v246_v61 = vld [vmem:[#allocation8 + $0x80] sm:$0xff]  ;;  %566 = vmatpush.msrb.mxu3 %v442_v60  ;;  %v315_v56 = vld [vmem:[#allocation8 + $0x2a8] sm:$0xff] }
  0x4e   :  { %v310_v62 = vld [vmem:[#allocation8 + $0x280] sm:$0xff]  ;;  %507 = vmatpush.msrb.mxu0 %v246_v61  ;;  %v383_v57 = vld [vmem:[#allocation8 + $0x4c8] sm:$0xff] }
  0x4f   :  { %v374_v63 = vld [vmem:[#allocation8 + $0x480] sm:$0xff]  ;;  %527 = vmatpush.msrb.mxu1 %v310_v62  ;;  %v447_v58 = vld [vmem:[#allocation8 + $0x6c8] sm:$0xff] }
  0x50   :  { %v438_v0 = vld [vmem:[#allocation8 + $0x680] sm:$0xff]  ;;  %547 = vmatpush.msrb.mxu2 %v374_v63  ;;  %v247_v59 = vld [vmem:[#allocation8 + $0x88] sm:$0xff] }
  0x51   :  { %v242_v1 = vld [vmem:[#allocation8 + $0x60] sm:$0xff]  ;;  %567 = vmatpush.msrb.mxu3 %v438_v0  ;;  %v311_v60 = vld [vmem:[#allocation8 + $0x288] sm:$0xff] }
  0x52   :  { %v306_v2 = vld [vmem:[#allocation8 + $0x260] sm:$0xff]  ;;  %508 = vmatpush.msrb.mxu0 %v242_v1  ;;  %v243_v61 = vld [vmem:[#allocation8 + $0x68] sm:$0xff] }
  0x53   :  { %v370_v3 = vld [vmem:[#allocation8 + $0x460] sm:$0xff]  ;;  %528 = vmatpush.msrb.mxu1 %v306_v2  ;;  %v307_v62 = vld [vmem:[#allocation8 + $0x268] sm:$0xff] }
  0x54   :  { %v434_v4 = vld [vmem:[#allocation8 + $0x660] sm:$0xff]  ;;  %548 = vmatpush.msrb.mxu2 %v370_v3  ;;  %v239_v63 = vld [vmem:[#allocation8 + $0x48] sm:$0xff] }
  0x55   :  { %v238_v5 = vld [vmem:[#allocation8 + $0x40] sm:$0xff]  ;;  %568 = vmatpush.msrb.mxu3 %v434_v4  ;;  %v303_v0 = vld [vmem:[#allocation8 + $0x248] sm:$0xff] }
  0x56   :  { %v302_v6 = vld [vmem:[#allocation8 + $0x240] sm:$0xff]  ;;  %509 = vmatpush.msrb.mxu0 %v238_v5  ;;  %v379_v1 = vld [vmem:[#allocation8 + $0x4a8] sm:$0xff] }
  0x57   :  { %v366_v7 = vld [vmem:[#allocation8 + $0x440] sm:$0xff]  ;;  %529 = vmatpush.msrb.mxu1 %v302_v6  ;;  %v443_v2 = vld [vmem:[#allocation8 + $0x6a8] sm:$0xff] }
  0x58   :  { %v430_v8 = vld [vmem:[#allocation8 + $0x640] sm:$0xff]  ;;  %549 = vmatpush.msrb.mxu2 %v366_v7  ;;  %v235_v3 = vld [vmem:[#allocation8 + $0x28] sm:$0xff] }
  0x59   :  { %v234_v9 = vld [vmem:[#allocation8 + $0x20] sm:$0xff]  ;;  %569 = vmatpush.msrb.mxu3 %v430_v8  ;;  %v299_v4 = vld [vmem:[#allocation8 + $0x228] sm:$0xff] }
  0x5a   :  { %v298_v10 = vld [vmem:[#allocation8 + $0x220] sm:$0xff]  ;;  %510 = vmatpush.msrb.mxu0 %v234_v9  ;;  %v375_v5 = vld [vmem:[#allocation8 + $0x488] sm:$0xff] }
  0x5b   :  { %v362_v11 = vld [vmem:[#allocation8 + $0x420] sm:$0xff]  ;;  %530 = vmatpush.msrb.mxu1 %v298_v10  ;;  %v439_v6 = vld [vmem:[#allocation8 + $0x688] sm:$0xff] }
  0x5c   :  { %v426_v12 = vld [vmem:[#allocation8 + $0x620] sm:$0xff]  ;;  %550 = vmatpush.msrb.mxu2 %v362_v11  ;;  %v231_v7 = vld [vmem:[#allocation8 + $0x8] sm:$0xff] }
  0x5d   :  { %v230_v13 = vld [vmem:[#allocation8] sm:$0xff]  ;;  %570 = vmatpush.msrb.mxu3 %v426_v12  ;;  %v295_v8 = vld [vmem:[#allocation8 + $0x208] sm:$0xff] }
  0x5e   :  { %v294_v14 = vld [vmem:[#allocation8 + $0x200] sm:$0xff]  ;;  %511 = vmatpush.msrb.mxu0 %v230_v13  ;;  %v371_v9 = vld [vmem:[#allocation8 + $0x468] sm:$0xff] }
  0x5f   :  { %v358_v17 = vld [vmem:[#allocation8 + $0x400] sm:$0xff]  ;;  %531 = vmatpush.msrb.mxu1 %v294_v14  ;;  %v435_v10 = vld [vmem:[#allocation8 + $0x668] sm:$0xff] }
  0x60   :  { %v422_v18 = vld [vmem:[#allocation8 + $0x600] sm:$0xff]  ;;  %576 = vmatpush.msra.mxu0 %v291_v15  ;;  %551 = vmatpush.msrb.mxu2 %v358_v17  ;;  %v367_v11 = vld [vmem:[#allocation8 + $0x448] sm:$0xff]  ;;  %v132_v17 = vld [vmem:[#allocation7] sm:$0xf] }
  0x61   :  { %596 = vmatpush.msra.mxu1 %v355_v16  ;;  %571 = vmatpush.msrb.mxu3 %v422_v18  ;;  %v431_v12 = vld [vmem:[#allocation8 + $0x648] sm:$0xff]  ;;  %v134_v18 = vperm.slane %v132_v17, 0 }
  0x62   :  { %577 = vmatpush.msra.mxu0 %v287_v19  ;;  %616 = vmatpush.msra.mxu2 %v419_v21  ;;  %v363_v13 = vld [vmem:[#allocation8 + $0x428] sm:$0xff]  ;;  %v135_v19 = vperm.slane %v132_v17, 1 }
  0x63   :  { %597 = vmatpush.msra.mxu1 %v351_v20  ;;  %636 = vmatpush.msra.mxu3 %v483_v22  ;;  %v427_v14 = vld [vmem:[#allocation8 + $0x628] sm:$0xff] }
  0x64   :  { %578 = vmatpush.msra.mxu0 %v283_v23  ;;  %617 = vmatpush.msra.mxu2 %v415_v25  ;;  %v359_v15 = vld [vmem:[#allocation8 + $0x408] sm:$0xff] }
  0x65   :  { %598 = vmatpush.msra.mxu1 %v347_v24  ;;  %637 = vmatpush.msra.mxu3 %v479_v26  ;;  %v423_v16 = vld [vmem:[#allocation8 + $0x608] sm:$0xff]  ;;  %v292_v26 = vld [vmem:[#allocation8 + $0x1f0] sm:$0xff] }
  0x66   :  { %579 = vmatpush.msra.mxu0 %v279_v27  ;;  %618 = vmatpush.msra.mxu2 %v411_v29  ;;  %v356_v27 = vld [vmem:[#allocation8 + $0x3f0] sm:$0xff]  ;;  %v137_v29 = vperm.slane %v132_v17, 3 }
  0x67   :  { %599 = vmatpush.msra.mxu1 %v343_v28  ;;  %638 = vmatpush.msra.mxu3 %v475_v30  ;;  %v136_v28 = vperm.slane %v132_v17, 2  ;;  %v288_v30 = vld [vmem:[#allocation8 + $0x1d0] sm:$0xff] }
  0x68   :  { %580 = vmatpush.msra.mxu0 %v275_v31  ;;  %619 = vmatpush.msra.mxu2 %v407_v33  ;;  %v352_v31 = vld [vmem:[#allocation8 + $0x3d0] sm:$0xff] }
  0x69   :  { %600 = vmatpush.msra.mxu1 %v339_v32  ;;  %639 = vmatpush.msra.mxu3 %v471_v34  ;;  %v284_v34 = vld [vmem:[#allocation8 + $0x1b0] sm:$0xff] }
  0x6a   :  { %581 = vmatpush.msra.mxu0 %v271_v35  ;;  %620 = vmatpush.msra.mxu2 %v403_v37  ;;  %v348_v35 = vld [vmem:[#allocation8 + $0x3b0] sm:$0xff] }
  0x6b   :  { %601 = vmatpush.msra.mxu1 %v335_v36  ;;  %640 = vmatpush.msra.mxu3 %v467_v38  ;;  %v304_v17 = vld [vmem:[#allocation8 + $0x250] sm:$0xff] }
  0x6c   :  { %582 = vmatpush.msra.mxu0 %v267_v39  ;;  %621 = vmatpush.msra.mxu2 %v399_v41  ;;  %v344_v41 = vld [vmem:[#allocation8 + $0x390] sm:$0xff] }
  0x6d   :  { %602 = vmatpush.msra.mxu1 %v331_v40  ;;  %641 = vmatpush.msra.mxu3 %v463_v42  ;;  %v280_v40 = vld [vmem:[#allocation8 + $0x190] sm:$0xff] }
  0x6e   :  { %583 = vmatpush.msra.mxu0 %v263_v43  ;;  %622 = vmatpush.msra.mxu2 %v395_v45  ;;  %v420_v42 = vld [vmem:[#allocation8 + $0x5f0] sm:$0xff] }
  0x6f   :  { %603 = vmatpush.msra.mxu1 %v327_v44  ;;  %642 = vmatpush.msra.mxu3 %v459_v46  ;;  %v484_v43 = vld [vmem:[#allocation8 + $0x7f0] sm:$0xff] }
  0x70   :  { %584 = vmatpush.msra.mxu0 %v259_v47  ;;  %623 = vmatpush.msra.mxu2 %v391_v49  ;;  %v340_v44 = vld [vmem:[#allocation8 + $0x370] sm:$0xff] }
  0x71   :  { %604 = vmatpush.msra.mxu1 %v323_v48  ;;  %643 = vmatpush.msra.mxu3 %v455_v50  ;;  %v276_v45 = vld [vmem:[#allocation8 + $0x170] sm:$0xff] }
  0x72   :  { %585 = vmatpush.msra.mxu0 %v255_v51  ;;  %624 = vmatpush.msra.mxu2 %v387_v53  ;;  %v416_v46 = vld [vmem:[#allocation8 + $0x5d0] sm:$0xff] }
  0x73   :  { %605 = vmatpush.msra.mxu1 %v319_v52  ;;  %644 = vmatpush.msra.mxu3 %v451_v54  ;;  %v480_v47 = vld [vmem:[#allocation8 + $0x7d0] sm:$0xff] }
  0x74   :  { %586 = vmatpush.msra.mxu0 %v251_v55  ;;  %625 = vmatpush.msra.mxu2 %v383_v57  ;;  %v272_v48 = vld [vmem:[#allocation8 + $0x150] sm:$0xff] }
  0x75   :  { %606 = vmatpush.msra.mxu1 %v315_v56  ;;  %645 = vmatpush.msra.mxu3 %v447_v58  ;;  %v336_v49 = vld [vmem:[#allocation8 + $0x350] sm:$0xff] }
  0x76   :  { %587 = vmatpush.msra.mxu0 %v247_v59  ;;  %626 = vmatpush.msra.mxu2 %v379_v1  ;;  %v412_v50 = vld [vmem:[#allocation8 + $0x5b0] sm:$0xff] }
  0x77   :  { %607 = vmatpush.msra.mxu1 %v311_v60  ;;  %646 = vmatpush.msra.mxu3 %v443_v2  ;;  %v476_v51 = vld [vmem:[#allocation8 + $0x7b0] sm:$0xff] }
  0x78   :  { %588 = vmatpush.msra.mxu0 %v243_v61  ;;  %627 = vmatpush.msra.mxu2 %v375_v5  ;;  %v268_v52 = vld [vmem:[#allocation8 + $0x130] sm:$0xff] }
  0x79   :  { %608 = vmatpush.msra.mxu1 %v307_v62  ;;  %647 = vmatpush.msra.mxu3 %v439_v6  ;;  %v332_v53 = vld [vmem:[#allocation8 + $0x330] sm:$0xff] }
  0x7a   :  { %589 = vmatpush.msra.mxu0 %v239_v63  ;;  %628 = vmatpush.msra.mxu2 %v371_v9  ;;  %v408_v54 = vld [vmem:[#allocation8 + $0x590] sm:$0xff] }
  0x7b   :  { %609 = vmatpush.msra.mxu1 %v303_v0  ;;  %648 = vmatpush.msra.mxu3 %v435_v10  ;;  %v472_v55 = vld [vmem:[#allocation8 + $0x790] sm:$0xff] }
  0x7c   :  { %590 = vmatpush.msra.mxu0 %v235_v3  ;;  %629 = vmatpush.msra.mxu2 %v367_v11  ;;  %v264_v56 = vld [vmem:[#allocation8 + $0x110] sm:$0xff] }
  0x7d   :  { %610 = vmatpush.msra.mxu1 %v299_v4  ;;  %649 = vmatpush.msra.mxu3 %v431_v12  ;;  %v328_v57 = vld [vmem:[#allocation8 + $0x310] sm:$0xff] }
  0x7e   :  { %591 = vmatpush.msra.mxu0 %v231_v7  ;;  %630 = vmatpush.msra.mxu2 %v363_v13  ;;  %v404_v58 = vld [vmem:[#allocation8 + $0x570] sm:$0xff] }
  0x7f   :  { %611 = vmatpush.msra.mxu1 %v295_v8  ;;  %650 = vmatpush.msra.mxu3 %v427_v14  ;;  %v468_v59 = vld [vmem:[#allocation8 + $0x770] sm:$0xff] }
  0x80   :  { %631 = vmatpush.msra.mxu2 %v359_v15  ;;  %v260_v60 = vld [vmem:[#allocation8 + $0xf0] sm:$0xff] }
  0x81   :  { %651 = vmatpush.msra.mxu3 %v423_v16  ;;  %v324_v61 = vld [vmem:[#allocation8 + $0x2f0] sm:$0xff] }
  0x82   :  { %v400_v62 = vld [vmem:[#allocation8 + $0x550] sm:$0xff] }
  0x83   :  { %v464_v63 = vld [vmem:[#allocation8 + $0x750] sm:$0xff] }
  0x84   :  { %v256_v0 = vld [vmem:[#allocation8 + $0xd0] sm:$0xff] }
  0x85   :  { %v320_v1 = vld [vmem:[#allocation8 + $0x2d0] sm:$0xff] }
  0x86   :  { %v396_v2 = vld [vmem:[#allocation8 + $0x530] sm:$0xff] }
  0x87   :  { %v460_v3 = vld [vmem:[#allocation8 + $0x730] sm:$0xff] }
  0x88   :  { %v252_v4 = vld [vmem:[#allocation8 + $0xb0] sm:$0xff] }
  0x89   :  { %v316_v5 = vld [vmem:[#allocation8 + $0x2b0] sm:$0xff] }
  0x8a   :  { %v392_v6 = vld [vmem:[#allocation8 + $0x510] sm:$0xff] }
  0x8b   :  { %v456_v7 = vld [vmem:[#allocation8 + $0x710] sm:$0xff] }
  0x8c   :  { %v248_v8 = vld [vmem:[#allocation8 + $0x90] sm:$0xff] }
  0x8d   :  { %v312_v9 = vld [vmem:[#allocation8 + $0x290] sm:$0xff] }
  0x8e   :  { %v388_v10 = vld [vmem:[#allocation8 + $0x4f0] sm:$0xff] }
  0x8f   :  { %v452_v11 = vld [vmem:[#allocation8 + $0x6f0] sm:$0xff] }
  0x90   :  { %v244_v12 = vld [vmem:[#allocation8 + $0x70] sm:$0xff] }
  0x91   :  { %v308_v13 = vld [vmem:[#allocation8 + $0x270] sm:$0xff] }
  0x92   :  { %v384_v14 = vld [vmem:[#allocation8 + $0x4d0] sm:$0xff] }
  0x93   :  { %v448_v15 = vld [vmem:[#allocation8 + $0x6d0] sm:$0xff] }
  0x94   :  { %v240_v16 = vld [vmem:[#allocation8 + $0x50] sm:$0xff] }
  0xa2   :  { %v163_v20 = vpop.f32.mrf.mxu0  ;;  %v183_v21 = vpop.f32.mrf.mxu1 }
  0xa3   :  { %v164_v22 = vadd.f32 %v163_v20, %v134_v18  ;;  %v184_v23 = vadd.f32 %v183_v21, %v135_v19  ;;  %v380_v18 = vld [vmem:[#allocation8 + $0x4b0] sm:$0xff] }
  0xa4   :  { %v444_v19 = vld [vmem:[#allocation8 + $0x6b0] sm:$0xff] }
  0xa5   :  { %v1252_v24 = vmax.f32 %v164_v22, 0.0  ;;  %v1254_v25 = vmax.f32 %v184_v23, 0.0  ;;  %v236_v20 = vld [vmem:[#allocation8 + $0x30] sm:$0xff] }
  0xa6   :  { %v300_v21 = vld [vmem:[#allocation8 + $0x230] sm:$0xff] }
  0xa7   :  { %512 = vmatmul.f32.vlgmr.msrb.gmra.mxu0 %v1252_v24  ;;  %532 = vmatmul.f32.vlgmr.msrb.gmra.mxu1 %v1254_v25  ;;  %v376_v22 = vld [vmem:[#allocation8 + $0x490] sm:$0xff] }
  0xa8   :  { %656 = vmatpush.msrb.mxu0 %v292_v26  ;;  %676 = vmatpush.msrb.mxu1 %v356_v27  ;;  %v440_v23 = vld [vmem:[#allocation8 + $0x690] sm:$0xff] }
  0xa9   :  { %v203_v32 = vpop.f32.mrf.mxu2  ;;  %v223_v33 = vpop.f32.mrf.mxu3  ;;  %v232_v26 = vld [vmem:[#allocation8 + $0x10] sm:$0xff] }
  0xaa   :  { %v204_v36 = vadd.f32 %v203_v32, %v136_v28  ;;  %v224_v37 = vadd.f32 %v223_v33, %v137_v29  ;;  %657 = vmatpush.msrb.mxu0 %v288_v30  ;;  %677 = vmatpush.msrb.mxu1 %v352_v31  ;;  %v296_v27 = vld [vmem:[#allocation8 + $0x210] sm:$0xff]  ;;  %v293_v30 = vld [vmem:[#allocation8 + $0x1f8] sm:$0xff] }
  0xab   :  { %v372_v28 = vld [vmem:[#allocation8 + $0x470] sm:$0xff]  ;;  %v357_v31 = vld [vmem:[#allocation8 + $0x3f8] sm:$0xff] }
  0xac   :  { %v1258_v38 = vmax.f32 %v204_v36, 0.0  ;;  %v1260_v39 = vmax.f32 %v224_v37, 0.0  ;;  %658 = vmatpush.msrb.mxu0 %v284_v34  ;;  %678 = vmatpush.msrb.mxu1 %v348_v35  ;;  %v436_v29 = vld [vmem:[#allocation8 + $0x670] sm:$0xff]  ;;  %v289_v34 = vld [vmem:[#allocation8 + $0x1d8] sm:$0xff] }
  0xad   :  { %v368_v32 = vld [vmem:[#allocation8 + $0x450] sm:$0xff]  ;;  %v353_v35 = vld [vmem:[#allocation8 + $0x3d8] sm:$0xff] }
  0xae   :  { %552 = vmatmul.f32.vlgmr.msrb.gmra.mxu2 %v1258_v38  ;;  %572 = vmatmul.f32.vlgmr.msrb.gmra.mxu3 %v1260_v39  ;;  %v432_v33 = vld [vmem:[#allocation8 + $0x650] sm:$0xff] }
  0xaf   :  { %659 = vmatpush.msrb.mxu0 %v280_v40  ;;  %679 = vmatpush.msrb.mxu1 %v344_v41  ;;  %v364_v36 = vld [vmem:[#allocation8 + $0x430] sm:$0xff]  ;;  %v285_v40 = vld [vmem:[#allocation8 + $0x1b8] sm:$0xff] }
  0xb0   :  { %696 = vmatpush.msrb.mxu2 %v420_v42  ;;  %716 = vmatpush.msrb.mxu3 %v484_v43  ;;  %v428_v37 = vld [vmem:[#allocation8 + $0x630] sm:$0xff]  ;;  %v349_v41 = vld [vmem:[#allocation8 + $0x3b8] sm:$0xff] }
  0xb1   :  { %592 = vmatmul.f32.vlgmr.msra.gmra.mxu0 %v1252_v24  ;;  %680 = vmatpush.msrb.mxu1 %v340_v44  ;;  %v360_v42 = vld [vmem:[#allocation8 + $0x410] sm:$0xff]  ;;  %v281_v44 = vld [vmem:[#allocation8 + $0x198] sm:$0xff] }
  0xb2   :  { %660 = vmatpush.msrb.mxu0 %v276_v45  ;;  %697 = vmatpush.msrb.mxu2 %v416_v46  ;;  %v424_v43 = vld [vmem:[#allocation8 + $0x610] sm:$0xff]  ;;  %v345_v45 = vld [vmem:[#allocation8 + $0x398] sm:$0xff] }
  0xb3   :  { %717 = vmatpush.msrb.mxu3 %v480_v47  ;;  %612 = vmatmul.f32.vlgmr.msra.gmra.mxu1 %v1254_v25  ;;  %v421_v46 = vld [vmem:[#allocation8 + $0x5f8] sm:$0xff] }
  0xb4   :  { %661 = vmatpush.msrb.mxu0 %v272_v48  ;;  %681 = vmatpush.msrb.mxu1 %v336_v49  ;;  %v485_v47 = vld [vmem:[#allocation8 + $0x7f8] sm:$0xff] }
  0xb5   :  { %698 = vmatpush.msrb.mxu2 %v412_v50  ;;  %718 = vmatpush.msrb.mxu3 %v476_v51  ;;  %v277_v48 = vld [vmem:[#allocation8 + $0x178] sm:$0xff] }
  0xb6   :  { %662 = vmatpush.msrb.mxu0 %v268_v52  ;;  %682 = vmatpush.msrb.mxu1 %v332_v53  ;;  %v341_v49 = vld [vmem:[#allocation8 + $0x378] sm:$0xff] }
  0xb7   :  { %699 = vmatpush.msrb.mxu2 %v408_v54  ;;  %719 = vmatpush.msrb.mxu3 %v472_v55  ;;  %v417_v50 = vld [vmem:[#allocation8 + $0x5d8] sm:$0xff] }
  0xb8   :  { %632 = vmatmul.f32.vlgmr.msra.gmra.mxu2 %v1258_v38  ;;  %652 = vmatmul.f32.vlgmr.msra.gmra.mxu3 %v1260_v39  ;;  %v481_v51 = vld [vmem:[#allocation8 + $0x7d8] sm:$0xff] }
  0xb9   :  { %663 = vmatpush.msrb.mxu0 %v264_v56  ;;  %683 = vmatpush.msrb.mxu1 %v328_v57  ;;  %v273_v52 = vld [vmem:[#allocation8 + $0x158] sm:$0xff] }
  0xba   :  { %700 = vmatpush.msrb.mxu2 %v404_v58  ;;  %720 = vmatpush.msrb.mxu3 %v468_v59  ;;  %v337_v53 = vld [vmem:[#allocation8 + $0x358] sm:$0xff] }
  0xbb   :  { %664 = vmatpush.msrb.mxu0 %v260_v60  ;;  %684 = vmatpush.msrb.mxu1 %v324_v61  ;;  %v413_v54 = vld [vmem:[#allocation8 + $0x5b8] sm:$0xff] }
  0xbc   :  { %701 = vmatpush.msrb.mxu2 %v400_v62  ;;  %721 = vmatpush.msrb.mxu3 %v464_v63  ;;  %v477_v55 = vld [vmem:[#allocation8 + $0x7b8] sm:$0xff] }
  0xbd   :  { %665 = vmatpush.msrb.mxu0 %v256_v0  ;;  %685 = vmatpush.msrb.mxu1 %v320_v1  ;;  %v269_v56 = vld [vmem:[#allocation8 + $0x138] sm:$0xff] }
  0xbe   :  { %702 = vmatpush.msrb.mxu2 %v396_v2  ;;  %722 = vmatpush.msrb.mxu3 %v460_v3  ;;  %v333_v57 = vld [vmem:[#allocation8 + $0x338] sm:$0xff] }
  0xbf   :  { %666 = vmatpush.msrb.mxu0 %v252_v4  ;;  %686 = vmatpush.msrb.mxu1 %v316_v5  ;;  %v409_v58 = vld [vmem:[#allocation8 + $0x598] sm:$0xff] }
  0xc0   :  { %703 = vmatpush.msrb.mxu2 %v392_v6  ;;  %723 = vmatpush.msrb.mxu3 %v456_v7  ;;  %v473_v59 = vld [vmem:[#allocation8 + $0x798] sm:$0xff] }
  0xc1   :  { %667 = vmatpush.msrb.mxu0 %v248_v8  ;;  %687 = vmatpush.msrb.mxu1 %v312_v9  ;;  %v265_v60 = vld [vmem:[#allocation8 + $0x118] sm:$0xff] }
  0xc2   :  { %704 = vmatpush.msrb.mxu2 %v388_v10  ;;  %724 = vmatpush.msrb.mxu3 %v452_v11  ;;  %v329_v61 = vld [vmem:[#allocation8 + $0x318] sm:$0xff] }
  0xc3   :  { %668 = vmatpush.msrb.mxu0 %v244_v12  ;;  %688 = vmatpush.msrb.mxu1 %v308_v13  ;;  %v405_v62 = vld [vmem:[#allocation8 + $0x578] sm:$0xff] }
  0xc4   :  { %705 = vmatpush.msrb.mxu2 %v384_v14  ;;  %725 = vmatpush.msrb.mxu3 %v448_v15  ;;  %v469_v63 = vld [vmem:[#allocation8 + $0x778] sm:$0xff] }
  0xc5   :  { %669 = vmatpush.msrb.mxu0 %v240_v16  ;;  %689 = vmatpush.msrb.mxu1 %v304_v17  ;;  %v261_v0 = vld [vmem:[#allocation8 + $0xf8] sm:$0xff] }
  0xc6   :  { %706 = vmatpush.msrb.mxu2 %v380_v18  ;;  %726 = vmatpush.msrb.mxu3 %v444_v19  ;;  %v325_v1 = vld [vmem:[#allocation8 + $0x2f8] sm:$0xff] }
  0xc7   :  { %670 = vmatpush.msrb.mxu0 %v236_v20  ;;  %690 = vmatpush.msrb.mxu1 %v300_v21  ;;  %v401_v2 = vld [vmem:[#allocation8 + $0x558] sm:$0xff] }
  0xc8   :  { %707 = vmatpush.msrb.mxu2 %v376_v22  ;;  %727 = vmatpush.msrb.mxu3 %v440_v23  ;;  %v465_v3 = vld [vmem:[#allocation8 + $0x758] sm:$0xff] }
  0xc9   :  { %671 = vmatpush.msrb.mxu0 %v232_v26  ;;  %691 = vmatpush.msrb.mxu1 %v296_v27  ;;  %v257_v4 = vld [vmem:[#allocation8 + $0xd8] sm:$0xff] }
  0xca   :  { %708 = vmatpush.msrb.mxu2 %v372_v28  ;;  %728 = vmatpush.msrb.mxu3 %v436_v29  ;;  %v321_v5 = vld [vmem:[#allocation8 + $0x2d8] sm:$0xff] }
  0xcb   :  { %672 = vmatmul.f32.vlgmr.msrb.gmra.mxu0 %v1252_v24  ;;  %692 = vmatmul.f32.vlgmr.msrb.gmra.mxu1 %v1254_v25  ;;  %v397_v6 = vld [vmem:[#allocation8 + $0x538] sm:$0xff] }
  0xcc   :  { %736 = vmatpush.msra.mxu0 %v293_v30  ;;  %756 = vmatpush.msra.mxu1 %v357_v31  ;;  %v461_v7 = vld [vmem:[#allocation8 + $0x738] sm:$0xff] }
  0xcd   :  { %709 = vmatpush.msrb.mxu2 %v368_v32  ;;  %729 = vmatpush.msrb.mxu3 %v432_v33  ;;  %v253_v8 = vld [vmem:[#allocation8 + $0xb8] sm:$0xff] }
  0xce   :  { %737 = vmatpush.msra.mxu0 %v289_v34  ;;  %757 = vmatpush.msra.mxu1 %v353_v35  ;;  %v317_v9 = vld [vmem:[#allocation8 + $0x2b8] sm:$0xff] }
  0xcf   :  { %710 = vmatpush.msrb.mxu2 %v364_v36  ;;  %730 = vmatpush.msrb.mxu3 %v428_v37  ;;  %v393_v10 = vld [vmem:[#allocation8 + $0x518] sm:$0xff] }
  0xd0   :  { %738 = vmatpush.msra.mxu0 %v285_v40  ;;  %758 = vmatpush.msra.mxu1 %v349_v41  ;;  %v457_v11 = vld [vmem:[#allocation8 + $0x718] sm:$0xff] }
  0xd1   :  { %711 = vmatpush.msrb.mxu2 %v360_v42  ;;  %731 = vmatpush.msrb.mxu3 %v424_v43  ;;  %v249_v12 = vld [vmem:[#allocation8 + $0x98] sm:$0xff] }
  0xd2   :  { %712 = vmatmul.f32.vlgmr.msrb.gmra.mxu2 %v1258_v38  ;;  %732 = vmatmul.f32.vlgmr.msrb.gmra.mxu3 %v1260_v39  ;;  %v313_v13 = vld [vmem:[#allocation8 + $0x298] sm:$0xff] }
  0xd3   :  { %739 = vmatpush.msra.mxu0 %v281_v44  ;;  %759 = vmatpush.msra.mxu1 %v345_v45  ;;  %v389_v14 = vld [vmem:[#allocation8 + $0x4f8] sm:$0xff] }
  0xd4   :  { %776 = vmatpush.msra.mxu2 %v421_v46  ;;  %796 = vmatpush.msra.mxu3 %v485_v47  ;;  %v453_v15 = vld [vmem:[#allocation8 + $0x6f8] sm:$0xff]  ;;  %v833_v46 = vld [vmem:[#allocation11 + $0x68] sm:$0xff] }
  0xd5   :  { %740 = vmatpush.msra.mxu0 %v277_v48  ;;  %760 = vmatpush.msra.mxu1 %v341_v49  ;;  %v245_v16 = vld [vmem:[#allocation8 + $0x78] sm:$0xff]  ;;  %v829_v48 = vld [vmem:[#allocation11 + $0x48] sm:$0xff] }
  0xd6   :  { %777 = vmatpush.msra.mxu2 %v417_v50  ;;  %797 = vmatpush.msra.mxu3 %v481_v51  ;;  %v309_v17 = vld [vmem:[#allocation8 + $0x278] sm:$0xff]  ;;  %v849_v49 = vld [vmem:[#allocation11 + $0xe8] sm:$0xff]  ;;  %v828_v50 = vld [vmem:[#allocation11 + $0x40] sm:$0xff] }
  0xd7   :  { %741 = vmatpush.msra.mxu0 %v273_v52  ;;  %761 = vmatpush.msra.mxu1 %v337_v53  ;;  %v385_v18 = vld [vmem:[#allocation8 + $0x4d8] sm:$0xff]  ;;  %v848_v51 = vld [vmem:[#allocation11 + $0xe0] sm:$0xff] }
  0xd8   :  { %778 = vmatpush.msra.mxu2 %v413_v54  ;;  %798 = vmatpush.msra.mxu3 %v477_v55  ;;  %v449_v19 = vld [vmem:[#allocation8 + $0x6d8] sm:$0xff]  ;;  %v845_v55 = vld [vmem:[#allocation11 + $0xc8] sm:$0xff] }
  0xd9   :  { %742 = vmatpush.msra.mxu0 %v269_v56  ;;  %762 = vmatpush.msra.mxu1 %v333_v57  ;;  %v241_v20 = vld [vmem:[#allocation8 + $0x58] sm:$0xff]  ;;  %v824_v56 = vld [vmem:[#allocation11 + $0x20] sm:$0xff] }
  0xda   :  { %779 = vmatpush.msra.mxu2 %v409_v58  ;;  %799 = vmatpush.msra.mxu3 %v473_v59  ;;  %v305_v21 = vld [vmem:[#allocation8 + $0x258] sm:$0xff]  ;;  %v844_v57 = vld [vmem:[#allocation11 + $0xc0] sm:$0xff] }
  0xdb   :  { %743 = vmatpush.msra.mxu0 %v265_v60  ;;  %763 = vmatpush.msra.mxu1 %v329_v61  ;;  %v381_v22 = vld [vmem:[#allocation8 + $0x4b8] sm:$0xff] }
  0xdc   :  { %780 = vmatpush.msra.mxu2 %v405_v62  ;;  %800 = vmatpush.msra.mxu3 %v469_v63  ;;  %v445_v23 = vld [vmem:[#allocation8 + $0x6b8] sm:$0xff]  ;;  %v821_v62 = vld [vmem:[#allocation11 + $0x8] sm:$0xff] }
  0xdd   :  { %744 = vmatpush.msra.mxu0 %v261_v0  ;;  %764 = vmatpush.msra.mxu1 %v325_v1  ;;  %v237_v26 = vld [vmem:[#allocation8 + $0x38] sm:$0xff]  ;;  %v841_v63 = vld [vmem:[#allocation11 + $0xa8] sm:$0xff]  ;;  %v820_v1 = vld [vmem:[#allocation11] sm:$0xff] }
  0xde   :  { %781 = vmatpush.msra.mxu2 %v401_v2  ;;  %801 = vmatpush.msra.mxu3 %v465_v3  ;;  %v301_v27 = vld [vmem:[#allocation8 + $0x238] sm:$0xff]  ;;  %v840_v2 = vld [vmem:[#allocation11 + $0xa0] sm:$0xff] }
  0xdf   :  { %745 = vmatpush.msra.mxu0 %v257_v4  ;;  %765 = vmatpush.msra.mxu1 %v321_v5  ;;  %v377_v28 = vld [vmem:[#allocation8 + $0x498] sm:$0xff] }
  0xe0   :  { %782 = vmatpush.msra.mxu2 %v397_v6  ;;  %802 = vmatpush.msra.mxu3 %v461_v7  ;;  %v441_v29 = vld [vmem:[#allocation8 + $0x698] sm:$0xff]  ;;  %v865_v6 = vld [vmem:[#allocation11 + $0x168] sm:$0xff] }
  0xe1   :  { %746 = vmatpush.msra.mxu0 %v253_v8  ;;  %766 = vmatpush.msra.mxu1 %v317_v9  ;;  %v233_v30 = vld [vmem:[#allocation8 + $0x18] sm:$0xff]  ;;  %v837_v7 = vld [vmem:[#allocation11 + $0x88] sm:$0xff]  ;;  %v864_v8 = vld [vmem:[#allocation11 + $0x160] sm:$0xff] }
  0xe2   :  { %783 = vmatpush.msra.mxu2 %v393_v10  ;;  %803 = vmatpush.msra.mxu3 %v457_v11  ;;  %v297_v31 = vld [vmem:[#allocation8 + $0x218] sm:$0xff]  ;;  %v1276_v9 = vld [vmem:[#allocation10] sm:$0xf]  ;;  %v836_v10 = vld [vmem:[#allocation11 + $0x80] sm:$0xff] }
  0xe3   :  { %747 = vmatpush.msra.mxu0 %v249_v12  ;;  %767 = vmatpush.msra.mxu1 %v313_v13  ;;  %v373_v32 = vld [vmem:[#allocation8 + $0x478] sm:$0xff]  ;;  %v488_v12 = vperm.slane %v1276_v9, 0 }
  0xe4   :  { %784 = vmatpush.msra.mxu2 %v389_v14  ;;  %804 = vmatpush.msra.mxu3 %v453_v15  ;;  %v437_v33 = vld [vmem:[#allocation8 + $0x678] sm:$0xff] }
  0xe5   :  { %748 = vmatpush.msra.mxu0 %v245_v16  ;;  %768 = vmatpush.msra.mxu1 %v309_v17  ;;  %v369_v34 = vld [vmem:[#allocation8 + $0x458] sm:$0xff]  ;;  %v861_v16 = vld [vmem:[#allocation11 + $0x148] sm:$0xff]  ;;  %v860_v17 = vld [vmem:[#allocation11 + $0x140] sm:$0xff] }
  0xe6   :  { %785 = vmatpush.msra.mxu2 %v385_v18  ;;  %805 = vmatpush.msra.mxu3 %v449_v19  ;;  %v433_v35 = vld [vmem:[#allocation8 + $0x658] sm:$0xff] }
  0xe7   :  { %749 = vmatpush.msra.mxu0 %v241_v20  ;;  %769 = vmatpush.msra.mxu1 %v305_v21  ;;  %v835_v36 = vld [vmem:[#allocation11 + $0x78] sm:$0xff]  ;;  %v834_v42 = vld [vmem:[#allocation11 + $0x70] sm:$0xff] }
  0xe8   :  { %786 = vmatpush.msra.mxu2 %v381_v22  ;;  %806 = vmatpush.msra.mxu3 %v445_v23  ;;  %v851_v37 = vld [vmem:[#allocation11 + $0xf8] sm:$0xff]  ;;  %v850_v43 = vld [vmem:[#allocation11 + $0xf0] sm:$0xff]  ;;  %v857_v22 = vld [vmem:[#allocation11 + $0x128] sm:$0xff] }
  0xe9   :  { %750 = vmatpush.msra.mxu0 %v237_v26  ;;  %770 = vmatpush.msra.mxu1 %v301_v27  ;;  %v365_v40 = vld [vmem:[#allocation8 + $0x438] sm:$0xff]  ;;  %v489_v26 = vperm.slane %v1276_v9, 1 }
  0xea   :  { %787 = vmatpush.msra.mxu2 %v377_v28  ;;  %807 = vmatpush.msra.mxu3 %v441_v29  ;;  %v429_v41 = vld [vmem:[#allocation8 + $0x638] sm:$0xff]  ;;  %v856_v28 = vld [vmem:[#allocation11 + $0x120] sm:$0xff] }
  0xeb   :  { %751 = vmatpush.msra.mxu0 %v233_v30  ;;  %771 = vmatpush.msra.mxu1 %v297_v31  ;;  %v361_v44 = vld [vmem:[#allocation8 + $0x418] sm:$0xff] }
  0xec   :  { %788 = vmatpush.msra.mxu2 %v373_v32  ;;  %808 = vmatpush.msra.mxu3 %v437_v33  ;;  %v425_v45 = vld [vmem:[#allocation8 + $0x618] sm:$0xff] }
  0xed   :  { %752 = vmatmul.f32.vlgmr.msra.gmra.mxu0 %v1252_v24  ;;  %772 = vmatmul.f32.vlgmr.msra.gmra.mxu1 %v1254_v25  ;;  %v832_v24 = vld [vmem:[#allocation11 + $0x60] sm:$0xff]  ;;  %v831_v25 = vld [vmem:[#allocation11 + $0x58] sm:$0xff]  ;;  %v830_v47 = vld [vmem:[#allocation11 + $0x50] sm:$0xff] }
  0xee   :  { %789 = vmatpush.msra.mxu2 %v369_v34  ;;  %809 = vmatpush.msra.mxu3 %v433_v35  ;;  %v827_v52 = vld [vmem:[#allocation11 + $0x38] sm:$0xff]  ;;  %v846_v54 = vld [vmem:[#allocation11 + $0xd0] sm:$0xff] }
  0xef   :  { %888 = vmatpush.msrb.mxu0 %v835_v36  ;;  %908 = vmatpush.msrb.mxu1 %v851_v37  ;;  %v847_v53 = vld [vmem:[#allocation11 + $0xd8] sm:$0xff]  ;;  %v822_v60 = vld [vmem:[#allocation11 + $0x10] sm:$0xff] }
  0xf0   :  { %790 = vmatpush.msra.mxu2 %v365_v40  ;;  %810 = vmatpush.msra.mxu3 %v429_v41  ;;  %v823_v58 = vld [vmem:[#allocation11 + $0x18] sm:$0xff]  ;;  %v842_v61 = vld [vmem:[#allocation11 + $0xb0] sm:$0xff]  ;;  %v853_v40 = vld [vmem:[#allocation11 + $0x108] sm:$0xff] }
  0xf1   :  { %889 = vmatpush.msrb.mxu0 %v834_v42  ;;  %909 = vmatpush.msrb.mxu1 %v850_v43  ;;  %v843_v59 = vld [vmem:[#allocation11 + $0xb8] sm:$0xff]  ;;  %v866_v4 = vld [vmem:[#allocation11 + $0x170] sm:$0xff]  ;;  %v852_v41 = vld [vmem:[#allocation11 + $0x100] sm:$0xff] }
  0xf2   :  { %791 = vmatpush.msra.mxu2 %v361_v44  ;;  %811 = vmatpush.msra.mxu3 %v425_v45  ;;  %v867_v0 = vld [vmem:[#allocation11 + $0x178] sm:$0xff]  ;;  %v838_v5 = vld [vmem:[#allocation11 + $0x90] sm:$0xff] }
  0xf3   :  { %792 = vmatmul.f32.vlgmr.msra.gmra.mxu2 %v1258_v38  ;;  %812 = vmatmul.f32.vlgmr.msra.gmra.mxu3 %v1260_v39  ;;  %v826_v38 = vld [vmem:[#allocation11 + $0x30] sm:$0xff]  ;;  %v825_v39 = vld [vmem:[#allocation11 + $0x28] sm:$0xff]  ;;  %v839_v3 = vld [vmem:[#allocation11 + $0x98] sm:$0xff] }
  0xf4   :  { %890 = vmatpush.msrb.mxu0 %v833_v46  ;;  %910 = vmatpush.msrb.mxu1 %v849_v49  ;;  %v863_v11 = vld [vmem:[#allocation11 + $0x158] sm:$0xff]  ;;  %v862_v13 = vld [vmem:[#allocation11 + $0x150] sm:$0xff] }
  0xf5   :  { %928 = vmatpush.msrb.mxu2 %v867_v0  ;;  %v859_v18 = vld [vmem:[#allocation11 + $0x138] sm:$0xff]  ;;  %v858_v21 = vld [vmem:[#allocation11 + $0x130] sm:$0xff] }
  0xf6   :  { %891 = vmatpush.msrb.mxu0 %v832_v24  ;;  %911 = vmatpush.msrb.mxu1 %v848_v51  ;;  %v855_v34 = vld [vmem:[#allocation11 + $0x118] sm:$0xff]  ;;  %v854_v36 = vld [vmem:[#allocation11 + $0x110] sm:$0xff]  ;;  %v877_v51 = vld [vmem:[#allocation11 + $0x1c8] sm:$0xff] }
  0xf7   :  { %929 = vmatpush.msrb.mxu2 %v866_v4  ;;  %v883_v44 = vld [vmem:[#allocation11 + $0x1f8] sm:$0xff]  ;;  %v882_v45 = vld [vmem:[#allocation11 + $0x1f0] sm:$0xff]  ;;  %v868_v4 = vld [vmem:[#allocation11 + $0x180] sm:$0xff] }
  0xf8   :  { %892 = vmatpush.msrb.mxu0 %v831_v25  ;;  %912 = vmatpush.msrb.mxu1 %v847_v53  ;;  %v881_v25 = vld [vmem:[#allocation11 + $0x1e8] sm:$0xff]  ;;  %v879_v49 = vld [vmem:[#allocation11 + $0x1d8] sm:$0xff]  ;;  %v490_v53 = vperm.slane %v1276_v9, 2  ;;  %v870_v0 = vld [vmem:[#allocation11 + $0x190] sm:$0xff] }
  0xf9   :  { %930 = vmatpush.msrb.mxu2 %v865_v6  ;;  %948 = vmatpush.msrb.mxu3 %v883_v44 }
  0xfa   :  { %893 = vmatpush.msrb.mxu0 %v830_v47  ;;  %913 = vmatpush.msrb.mxu1 %v846_v54  ;;  %v875_v54 = vld [vmem:[#allocation11 + $0x1b8] sm:$0xff] }
  0xfb   :  { %931 = vmatpush.msrb.mxu2 %v864_v8  ;;  %949 = vmatpush.msrb.mxu3 %v882_v45 }
  0xfc   :  { %894 = vmatpush.msrb.mxu0 %v829_v48  ;;  %914 = vmatpush.msrb.mxu1 %v845_v55  ;;  %v880_v48 = vld [vmem:[#allocation11 + $0x1e0] sm:$0xff]  ;;  %v873_v55 = vld [vmem:[#allocation11 + $0x1a8] sm:$0xff] }
  0xfd   :  { %932 = vmatpush.msrb.mxu2 %v863_v11  ;;  %950 = vmatpush.msrb.mxu3 %v881_v25 }
  0xfe   :  { %895 = vmatpush.msrb.mxu0 %v828_v50  ;;  %915 = vmatpush.msrb.mxu1 %v844_v57  ;;  %v878_v50 = vld [vmem:[#allocation11 + $0x1d0] sm:$0xff]  ;;  %v872_v57 = vld [vmem:[#allocation11 + $0x1a0] sm:$0xff] }
  0xff   :  { %933 = vmatpush.msrb.mxu2 %v862_v13  ;;  %951 = vmatpush.msrb.mxu3 %v880_v48 }
 0x100   :  { %896 = vmatpush.msrb.mxu0 %v827_v52  ;;  %916 = vmatpush.msrb.mxu1 %v843_v59  ;;  %v876_v52 = vld [vmem:[#allocation11 + $0x1c0] sm:$0xff] }
 0x101   :  { %934 = vmatpush.msrb.mxu2 %v861_v16  ;;  %952 = vmatpush.msrb.mxu3 %v879_v49  ;;  %v1004_v16 = vld [vmem:[%s1294_s6] ss:$0 sm:$0xff] }
 0x102   :  { %897 = vmatpush.msrb.mxu0 %v826_v38  ;;  %917 = vmatpush.msrb.mxu1 %v842_v61  ;;  %v871_v61 = vld [vmem:[#allocation11 + $0x198] sm:$0xff] }
 0x103   :  { %935 = vmatpush.msrb.mxu2 %v860_v17  ;;  %953 = vmatpush.msrb.mxu3 %v878_v50 }
 0x104   :  { %898 = vmatpush.msrb.mxu0 %v825_v39  ;;  %918 = vmatpush.msrb.mxu1 %v841_v63  ;;  %v874_v39 = vld [vmem:[#allocation11 + $0x1b0] sm:$0xff] }
 0x105   :  { %936 = vmatpush.msrb.mxu2 %v859_v18  ;;  %954 = vmatpush.msrb.mxu3 %v877_v51 }
 0x106   :  { %899 = vmatpush.msrb.mxu0 %v824_v56  ;;  %919 = vmatpush.msrb.mxu1 %v840_v2  ;;  %v869_v2 = vld [vmem:[#allocation11 + $0x188] sm:$0xff] }
 0x107   :  { %937 = vmatpush.msrb.mxu2 %v858_v21  ;;  %955 = vmatpush.msrb.mxu3 %v876_v52 }
 0x108   :  { %900 = vmatpush.msrb.mxu0 %v823_v58  ;;  %920 = vmatpush.msrb.mxu1 %v839_v3 }
 0x109   :  { %938 = vmatpush.msrb.mxu2 %v857_v22  ;;  %956 = vmatpush.msrb.mxu3 %v875_v54 }
 0x10a   :  { %901 = vmatpush.msrb.mxu0 %v822_v60  ;;  %921 = vmatpush.msrb.mxu1 %v838_v5  ;;  %v491_v5 = vperm.slane %v1276_v9, 3 }
 0x10b   :  { %939 = vmatpush.msrb.mxu2 %v856_v28  ;;  %957 = vmatpush.msrb.mxu3 %v874_v39 }
 0x10c   :  { %902 = vmatpush.msrb.mxu0 %v821_v62  ;;  %922 = vmatpush.msrb.mxu1 %v837_v7 }
 0x10d   :  { %940 = vmatpush.msrb.mxu2 %v855_v34  ;;  %958 = vmatpush.msrb.mxu3 %v873_v55 }
 0x10e   :  { %903 = vmatpush.msrb.mxu0 %v820_v1  ;;  %923 = vmatpush.msrb.mxu1 %v836_v10 }
 0x10f   :  { %941 = vmatpush.msrb.mxu2 %v854_v36  ;;  %959 = vmatpush.msrb.mxu3 %v872_v57 }
 0x111   :  { %942 = vmatpush.msrb.mxu2 %v853_v40  ;;  %960 = vmatpush.msrb.mxu3 %v871_v61 }
 0x113   :  { %943 = vmatpush.msrb.mxu2 %v852_v41  ;;  %961 = vmatpush.msrb.mxu3 %v870_v0 }
 0x115   :  { %962 = vmatpush.msrb.mxu3 %v869_v2 }
 0x117   :  { %963 = vmatpush.msrb.mxu3 %v868_v4 }
 0x124   :  { %v513_v14 = vpop.f32.mrf.mxu0  ;;  %v533_v19 = vpop.f32.mrf.mxu1 }
 0x125   :  { %v514_v15 = vadd.f32 %v513_v14, %v488_v12 }
 0x127   :  { %v534_v20 = vadd.f32 %v533_v19, %v514_v15 }
 0x12e   :  { %v593_v29 = vpop.f32.mrf.mxu0 }
 0x12f   :  { %v594_v32 = vadd.f32 %v593_v29, %v489_v26 }
 0x130   :  { %v613_v35 = vpop.f32.mrf.mxu1 }
 0x131   :  { %v553_v23 = vpop.f32.mrf.mxu2  ;;  %v573_v30 = vpop.f32.mrf.mxu3  ;;  %v614_v37 = vadd.f32 %v613_v35, %v594_v32 }
 0x132   :  { %v554_v27 = vadd.f32 %v553_v23, %v534_v20 }
 0x134   :  { %v574_v31 = vadd.f32 %v573_v30, %v554_v27 }
 0x136   :  { %v816_v33 = vmax.f32 %v574_v31, 0.0 }
 0x138   :  { %904 = vmatmul.f32.vlgmr.msrb.gmra.mxu0 %v816_v33 }
 0x13b   :  { %v633_v42 = vpop.f32.mrf.mxu2  ;;  %v653_v46 = vpop.f32.mrf.mxu3 }
 0x13c   :  { %v634_v43 = vadd.f32 %v633_v42, %v614_v37 }
 0x13e   :  { %v654_v24 = vadd.f32 %v653_v46, %v634_v43 }
 0x140   :  { %v817_v47 = vmax.f32 %v654_v24, 0.0 }
 0x142   :  { %924 = vmatmul.f32.vlgmr.msrb.gmra.mxu1 %v817_v47 }
 0x148   :  { %v673_v38 = vpop.f32.mrf.mxu0  ;;  %v693_v58 = vpop.f32.mrf.mxu1 }
 0x149   :  { %v674_v56 = vadd.f32 %v673_v38, %v490_v53 }
 0x14b   :  { %v694_v59 = vadd.f32 %v693_v58, %v674_v56 }
 0x155   :  { %v713_v60 = vpop.f32.mrf.mxu2  ;;  %v733_v63 = vpop.f32.mrf.mxu3 }
 0x156   :  { %v714_v62 = vadd.f32 %v713_v60, %v694_v59 }
 0x158   :  { %v734_v1 = vadd.f32 %v733_v63, %v714_v62 }
 0x15a   :  { %v818_v3 = vmax.f32 %v734_v1, 0.0 }
 0x15c   :  { %944 = vmatmul.f32.vlgmr.msrb.gmra.mxu2 %v818_v3 }
 0x16a   :  { %v753_v6 = vpop.f32.mrf.mxu0  ;;  %v773_v8 = vpop.f32.mrf.mxu1 }
 0x16b   :  { %v754_v7 = vadd.f32 %v753_v6, %v491_v5 }
 0x16d   :  { %v774_v10 = vadd.f32 %v773_v8, %v754_v7 }
 0x176   :  { %v793_v11 = vpop.f32.mrf.mxu2  ;;  %v813_v13 = vpop.f32.mrf.mxu3 }
 0x177   :  { %v794_v12 = vadd.f32 %v793_v11, %v774_v10 }
 0x179   :  { %v814_v14 = vadd.f32 %v813_v13, %v794_v12 }
 0x17b   :  { %v819_v15 = vmax.f32 %v814_v14, 0.0 }
 0x17d   :  { %964 = vmatmul.f32.vlgmr.msrb.gmra.mxu3 %v819_v15 }
 0x1b5   :  { %v905_v17 = vpop.f32.mrf.mxu0 }
 0x1b6   :  { %v906_v19 = vadd.f32 %v1004_v16, %v905_v17 }
 0x1bf   :  { %v925_v18 = vpop.f32.mrf.mxu1 }
 0x1c0   :  { %v926_v21 = vadd.f32 %v925_v18, %v906_v19 }
 0x1df   :  { %v945_v20 = vpop.f32.mrf.mxu2 }
 0x1e0   :  { %v946_v9 = vadd.f32 %v945_v20, %v926_v21 }
 0x200   :  { %v965_v22 = vpop.f32.mrf.mxu3 }
 0x201   :  { %v966_v23 = vadd.f32 %v965_v22, %v946_v9 }
 0x203   :  { %968 = vst [vmem:[#allocation13] sm:$0xff] %v966_v23 }
 0x204   :  { %979 = dma.vmem_to_hbm [thread:$0]  %s975_s9, 128, %s977_s12, [#allocation4]  }
 0x205   :  { %1181 = dma.done.wait [#allocation4], 128  }
 0x206   :  { %1182 = vsyncadd [#allocation4], 4294967168 }
 0x207   :  { %984 = vsyncpa [#allocation3], 1 }
 0x208   :  { %985 = vsyncpa [#allocation6], 1 }
 0x209   :  { %986 = vsyncpa [#allocation9], 1 }
 0x20a   :  { %987 = vsyncpa [#allocation12], 1 }
 0x20b   :  { %988 = vsyncpa [#allocation4], 1 }

</bundles_post_ra>
